<compile_context>
chip_gen: v5e
topology: v5e:2x2
jax: 0.10.0
libtpu: 0.0.40
codegen_flags: <defaults>
</compile_context>

<pallas_src>
import functools
import math

import jax
import jax.numpy as jnp
from jax import lax
from jax.experimental import pallas as pl
from jax.experimental.pallas import tpu as pltpu


# ---------------------------------------------------------------------------
# Kernel
# ---------------------------------------------------------------------------
def _sdpa_kernel(q_ref, k_ref, v_ref, o_ref, qs_ref, acc_ref, lsum_ref, *,
                 tk, l_valid, resident, need_mask, scale):
    # q_ref: (1, TQ, D)
    # k_ref/v_ref: (1, L_pad, D) when resident else (1, TK, D)
    # o_ref: (1, TQ, D)
    # qs_ref:  (TQ, D) input dtype -- q * 1/sqrt(d_k), hoisted out of the KV loop
    # acc_ref: (TQ, D) f32         -- output accumulator (persists across KV tiles)
    # lsum_ref:(TQ, 1) f32         -- running row-sum of exp(scores)
    j = pl.program_id(2)

    @pl.when(j == 0)
    def _init():
        acc_ref[...] = jnp.zeros_like(acc_ref)
        lsum_ref[...] = jnp.zeros_like(lsum_ref)
        qv = q_ref[0]
        qs_ref[...] = (qv * jnp.asarray(scale, qv.dtype)).astype(qs_ref.dtype)

    if resident:
        # K/V are resident in VMEM for the whole batch element; slice this KV tile.
        off = pl.multiple_of(j * tk, tk)
        kt = k_ref[0, pl.ds(off, tk), :]            # (TK, D)
        vt = v_ref[0, pl.ds(off, tk), :]            # (TK, D)
    else:
        kt = k_ref[0]                               # (TK, D)
        vt = v_ref[0]                               # (TK, D)

    # s = (q/sqrt(d_k)) @ k^T without materializing the transpose; f32 MXU accumulation.
    s = lax.dot_general(
        qs_ref[...], kt,
        dimension_numbers=(((1,), (1,)), ((), ())),
        preferred_element_type=jnp.float32,
    )                                               # (TQ, TK) f32

    # Plain exp (no max subtraction), exactly like the reference.
    p = jnp.exp(s)

    if need_mask:
        # Zero the contribution of padded key rows (global key index >= l_valid).
        col = lax.broadcasted_iota(jnp.int32, p.shape, 1) + j * tk
        p = jnp.where(col < l_valid, p, 0.0)

    lsum_ref[...] += jnp.sum(p, axis=-1, keepdims=True)
    acc_ref[...] += jnp.dot(p.astype(vt.dtype), vt,
                            preferred_element_type=jnp.float32)

    @pl.when(j == pl.num_programs(2) - 1)
    def _finalize():
        lv = lsum_ref[...]
        # EUP approx reciprocal + one Newton step -> near-exact f32 1/l.
        r = pl.reciprocal(lv, approx=True)
        r = r * (2.0 - lv * r)
        o_ref[0] = (acc_ref[...] * r).astype(o_ref.dtype)


# ---------------------------------------------------------------------------
# Tile / VMEM budgeting helpers (host side, all static Python ints)
# ---------------------------------------------------------------------------
def _round_up(x, m):
    return ((x + m - 1) // m) * m


def _next_pow2(x):
    p = 1
    while p < x:
        p *= 2
    return p


def _snap_down_pow2x8(x):
    """Largest value of the form 8*2^k that is <= max(x, 8)."""
    x = max(int(x), 8)
    t = 8
    while t * 2 <= x:
        t *= 2
    return t


def _ladder_ceil(x):
    """Smallest value of the form 8*2^k that is >= x."""
    return 8 * _next_pow2((int(x) + 7) // 8)


def _vmem_budget(tq, tk, kv_rows, d, in_itemsize):
    b = 0
    b += 2 * tq * d * in_itemsize            # Q block, double-buffered
    b += 2 * 2 * kv_rows * d * in_itemsize   # K + V blocks, double-buffered
    b += 2 * tq * d * in_itemsize            # output block, double-buffered
    b += tq * d * in_itemsize                # scaled-Q scratch
    b += tq * d * 4                          # f32 accumulator scratch
    b += tq * 128 * 4                        # row-sum scratch (lane padded)
    b += tq * tk * (4 + 4 + in_itemsize)     # score / exp / cast temporaries
    return b


# ---------------------------------------------------------------------------
# Wrapper
# ---------------------------------------------------------------------------
def scaled_dot_product_attention(q, k, v, *, tq=512, tk=2048):
    """q, k, v: (n, l, d) arrays. Returns (n, l, d)."""
    n, l, d = q.shape
    assert k.shape == (n, l, d) and v.shape == (n, l, d)
    assert q.dtype == k.dtype == v.dtype

    in_itemsize = jnp.dtype(q.dtype).itemsize
    # Conservative budget: leaves headroom under v7x's 64 MiB physical VMEM and is
    # far below v5e/v6e's 128 MiB.
    vmem_cap = 40 * 1024 * 1024

    lcap = _ladder_ceil(l)
    tq_e = min(_snap_down_pow2x8(tq), lcap)
    tk_e = min(_snap_down_pow2x8(tk), lcap)

    # Shrink tiles while padding overhead exceeds ~25% (the tail is handled by zero
    # padding + an in-kernel key mask, so padding is pure wasted compute).
    while True:
        g = max(tq_e, tk_e)
        l_pad = _round_up(l, g)
        if g <= 128 or (l_pad - l) * 4 <= l_pad:
            break
        if tk_e >= tq_e:
            tk_e //= 2
        else:
            tq_e //= 2
    l_pad = _round_up(l, max(tq_e, tk_e))

    # Resident-KV path: keep the whole (padded) K and V of one batch element in VMEM
    # (fetched once per batch) whenever the total VMEM budget allows it; otherwise
    # fall back to per-tile K/V streaming and shrink tiles until the budget fits.
    resident = _vmem_budget(tq_e, tk_e, l_pad, d, in_itemsize) <= vmem_cap
    if not resident:
        while _vmem_budget(tq_e, tk_e, tk_e, d, in_itemsize) > vmem_cap and tk_e > 128:
            tk_e //= 2
        while _vmem_budget(tq_e, tk_e, tk_e, d, in_itemsize) > vmem_cap and tq_e > 128:
            tq_e //= 2

    # Keep at least 2 parallel grid points so a 2-TensorCore chip (v7x) is not half idle.
    while n * (l_pad // tq_e) < 2 and tq_e > 8:
        tq_e //= 2

    nq = l_pad // tq_e
    nk = l_pad // tk_e
    need_mask = l_pad != l

    if need_mask:
        pad = l_pad - l
        q = jnp.pad(q, ((0, 0), (0, pad), (0, 0)))
        k = jnp.pad(k, ((0, 0), (0, pad), (0, 0)))
        v = jnp.pad(v, ((0, 0), (0, pad), (0, 0)))

    kv_rows = l_pad if resident else tk_e
    budget = _vmem_budget(tq_e, tk_e, kv_rows, d, in_itemsize)
    vmem_limit = int(min(max(budget * 1.25 + (4 << 20), 32 << 20), 56 << 20))

    if resident:
        k_spec = pl.BlockSpec((1, l_pad, d), lambda b, i, j: (b, 0, 0))
        v_spec = pl.BlockSpec((1, l_pad, d), lambda b, i, j: (b, 0, 0))
    else:
        k_spec = pl.BlockSpec((1, tk_e, d), lambda b, i, j: (b, j, 0))
        v_spec = pl.BlockSpec((1, tk_e, d), lambda b, i, j: (b, j, 0))

    # HBM traffic: Q and the output move once; K/V move once per batch (resident)
    # or once per Q tile (tiled).
    kv_reads = 2 if resident else 2 * nq
    cost = pl.CostEstimate(
        flops=int(4 * n * l_pad * l_pad * d),       # two matmuls: 2*L*L*D each
        transcendentals=int(n * l_pad * l_pad),     # exp on every score element
        bytes_accessed=int(n * l_pad * d * in_itemsize * (2 + kv_reads)),
    )

    kernel = functools.partial(
        _sdpa_kernel,
        tk=tk_e,
        l_valid=l,
        resident=resident,
        need_mask=need_mask,
        scale=1.0 / math.sqrt(d),
    )

    out = pl.pallas_call(
        kernel,
        out_shape=jax.ShapeDtypeStruct((n, l_pad, d), q.dtype),
        grid_spec=pltpu.PrefetchScalarGridSpec(
            num_scalar_prefetch=0,
            grid=(n, nq, nk),
            in_specs=[
                pl.BlockSpec((1, tq_e, d), lambda b, i, j: (b, i, 0)),
                k_spec,
                v_spec,
            ],
            out_specs=pl.BlockSpec((1, tq_e, d), lambda b, i, j: (b, i, 0)),
            scratch_shapes=[
                pltpu.VMEM((tq_e, d), q.dtype),      # scaled Q (hoisted)
                pltpu.VMEM((tq_e, d), jnp.float32),  # output accumulator
                pltpu.VMEM((tq_e, 1), jnp.float32),  # running row sum of exp(s)
            ],
        ),
        compiler_params=pltpu.CompilerParams(
            dimension_semantics=("parallel", "parallel", "arbitrary"),
            vmem_limit_bytes=vmem_limit,
        ),
        cost_estimate=cost,
    )(q, k, v)

    if need_mask:
        out = out[:, :l, :]
    return out


# ---------------------------------------------------------------------------
# Reference + test
# ---------------------------------------------------------------------------
def _reference(q, k, v):
    d_k = k.shape[-1]
    attn = jnp.einsum("nld,nmd->nlm", q, k) / math.sqrt(d_k)
    attn = jnp.exp(attn)
    attn = attn / jnp.sum(attn, axis=-1, keepdims=True)
    return jnp.einsum("nlm,nmd->nld", attn, v)


if __name__ == "__main__":
    key = jax.random.PRNGKey(0)

    # Primary small case consistent with the module: batch=2, seq=8, hidden=32.
    kq, kk, kv_ = jax.random.split(key, 3)
    n, l, d = 2, 8, 32
    q = jax.random.normal(kq, (n, l, d), dtype=jnp.float32)
    k = jax.random.normal(kk, (n, l, d), dtype=jnp.float32)
    v = jax.random.normal(kv_, (n, l, d), dtype=jnp.float32)

    out = scaled_dot_product_attention(q, k, v)
    out = jax.block_until_ready(out)
    ref = _reference(q, k, v)
    assert out.shape == (n, l, d)
    assert jnp.allclose(out, ref, atol=1e-3, rtol=1e-3), "mismatch vs reference (l=8)"

    # Secondary case: non-divisible seq length exercises zero-padding + key mask.
    kq2, kk2, kv2 = jax.random.split(jax.random.PRNGKey(1), 3)
    n2, l2, d2 = 2, 200, 32
    q2 = jax.random.normal(kq2, (n2, l2, d2), dtype=jnp.float32)
    k2 = jax.random.normal(kk2, (n2, l2, d2), dtype=jnp.float32)
    v2 = jax.random.normal(kv2, (n2, l2, d2), dtype=jnp.float32)
    out2 = jax.block_until_ready(scaled_dot_product_attention(q2, k2, v2))
    ref2 = _reference(q2, k2, v2)
    assert out2.shape == (n2, l2, d2)
    assert jnp.allclose(out2, ref2, atol=1e-3, rtol=1e-3), "mismatch vs reference (l=200)"

    print("KERNEL_OK")
</pallas_src>

<mosaic_0001>
module attributes {stable_mosaic.version = 11 : i64} {
  func.func @_sdpa_kernel(%arg0: i32, %arg1: i32, %arg2: i32, %arg3: memref<1x8x32xf32, #tpu.memory_space<vmem>>, %arg4: memref<1x8x32xf32, #tpu.memory_space<vmem>>, %arg5: memref<1x8x32xf32, #tpu.memory_space<vmem>>, %arg6: memref<1x8x32xf32, #tpu.memory_space<vmem>>, %arg7: memref<8x32xf32, #tpu.memory_space<vmem>>, %arg8: memref<8x32xf32, #tpu.memory_space<vmem>>, %arg9: memref<8x1xf32, #tpu.memory_space<vmem>>) attributes {dimension_semantics = [#tpu.dimension_semantics<parallel>, #tpu.dimension_semantics<parallel>, #tpu.dimension_semantics<arbitrary>], iteration_bounds = array<i64: 2, 1, 1>, scalar_prefetch = 0 : i64, scratch_operands = 3 : i64, tpu.core_type = #tpu.core_type<tc>, window_params = [{transform_indices = @transform_0, window_bounds = array<i64: 1, 8, 32>}, {transform_indices = @transform_1, window_bounds = array<i64: 1, 8, 32>}, {transform_indices = @transform_2, window_bounds = array<i64: 1, 8, 32>}, {transform_indices = @transform_3, window_bounds = array<i64: 1, 8, 32>}]} {
    %c0_i32 = arith.constant 0 : i32
    %0 = arith.cmpi eq, %arg2, %c0_i32 : i32
    %1 = arith.extui %0 : i1 to i32
    %c0_i32_0 = arith.constant 0 : i32
    %2 = arith.cmpi ne, %1, %c0_i32_0 : i32
    scf.if %2 {
      %cst_18 = arith.constant 0.000000e+00 : f32
      %26 = vector.broadcast %cst_18 : f32 to vector<8x32xf32>
      %c0_19 = arith.constant 0 : index
      %c0_20 = arith.constant 0 : index
      %27 = vector.load %arg8[%c0_19, %c0_20] : memref<8x32xf32, #tpu.memory_space<vmem>>, vector<8x32xf32>
      tpu.vector_store %arg8[%c0_19, %c0_20], %26 {strides = array<i32>} : memref<8x32xf32, #tpu.memory_space<vmem>>, vector<8x32xf32>,
      %cst_21 = arith.constant 0.000000e+00 : f32
      %28 = vector.broadcast %cst_21 : f32 to vector<8x1xf32>
      %c0_22 = arith.constant 0 : index
      %c0_23 = arith.constant 0 : index
      %29 = vector.load %arg9[%c0_22, %c0_23] : memref<8x1xf32, #tpu.memory_space<vmem>>, vector<8x1xf32>
      tpu.vector_store %arg9[%c0_22, %c0_23], %28 {strides = array<i32>} : memref<8x1xf32, #tpu.memory_space<vmem>>, vector<8x1xf32>,
      %c0_24 = arith.constant 0 : index
      %c0_25 = arith.constant 0 : index
      %c0_26 = arith.constant 0 : index
      %30 = vector.load %arg3[%c0_24, %c0_25, %c0_26] : memref<1x8x32xf32, #tpu.memory_space<vmem>>, vector<1x8x32xf32>
      %31 = vector.shape_cast %30 : vector<1x8x32xf32> to vector<8x32xf32>
      %cst_27 = arith.constant 0.176776692 : f32
      %32 = vector.broadcast %cst_27 : f32 to vector<8x32xf32>
      %33 = arith.mulf %31, %32 : vector<8x32xf32>
      %c0_28 = arith.constant 0 : index
      %c0_29 = arith.constant 0 : index
      %34 = vector.load %arg7[%c0_28, %c0_29] : memref<8x32xf32, #tpu.memory_space<vmem>>, vector<8x32xf32>
      tpu.vector_store %arg7[%c0_28, %c0_29], %33 {strides = array<i32>} : memref<8x32xf32, #tpu.memory_space<vmem>>, vector<8x32xf32>,
    } else {
    }
    %c8_i32 = arith.constant 8 : i32
    %3 = arith.muli %arg2, %c8_i32 : i32
    %4 = tpu.assume_multiple %3, 8 : i32
    %c0 = arith.constant 0 : index
    %5 = arith.index_cast %4 : i32 to index
    %c0_1 = arith.constant 0 : index
    %6 = vector.load %arg4[%c0, %5, %c0_1] : memref<1x8x32xf32, #tpu.memory_space<vmem>>, vector<1x8x32xf32>
    %7 = vector.shape_cast %6 : vector<1x8x32xf32> to vector<8x32xf32>
    %c0_2 = arith.constant 0 : index
    %8 = arith.index_cast %4 : i32 to index
    %c0_3 = arith.constant 0 : index
    %9 = vector.load %arg5[%c0_2, %8, %c0_3] : memref<1x8x32xf32, #tpu.memory_space<vmem>>, vector<1x8x32xf32>
    %10 = vector.shape_cast %9 : vector<1x8x32xf32> to vector<8x32xf32>
    %c0_4 = arith.constant 0 : index
    %c0_5 = arith.constant 0 : index
    %11 = vector.load %arg7[%c0_4, %c0_5] : memref<8x32xf32, #tpu.memory_space<vmem>>, vector<8x32xf32>
    %cst = arith.constant dense<0.000000e+00> : vector<8x8xf32>
    %12 = tpu.matmul %11, %7, %cst {dimension_numbers = #tpu.dot_dimension_numbers<[1], [1], [0], [0], [0, 0, 1, 0], [], []>} : vector<8x32xf32>, vector<8x32xf32>, vector<8x8xf32> -> vector<8x8xf32>
    %13 = math.exp %12 : vector<8x8xf32>
    %c0_6 = arith.constant 0 : index
    %c0_7 = arith.constant 0 : index
    %14 = vector.load %arg9[%c0_6, %c0_7] : memref<8x1xf32, #tpu.memory_space<vmem>>, vector<8x1xf32>
    %cst_8 = arith.constant dense<0.000000e+00> : vector<8xf32>
    %15 = vector.multi_reduction <add>, %13, %cst_8 [1] : vector<8x8xf32> to vector<8xf32>
    %16 = vector.shape_cast %15 : vector<8xf32> to vector<8x1xf32>
    %17 = arith.addf %14, %16 : vector<8x1xf32>
    %c0_9 = arith.constant 0 : index
    %c0_10 = arith.constant 0 : index
    %18 = vector.load %arg9[%c0_9, %c0_10] : memref<8x1xf32, #tpu.memory_space<vmem>>, vector<8x1xf32>
    tpu.vector_store %arg9[%c0_9, %c0_10], %17 {strides = array<i32>} : memref<8x1xf32, #tpu.memory_space<vmem>>, vector<8x1xf32>,
    %c0_11 = arith.constant 0 : index
    %c0_12 = arith.constant 0 : index
    %19 = vector.load %arg8[%c0_11, %c0_12] : memref<8x32xf32, #tpu.memory_space<vmem>>, vector<8x32xf32>
    %cst_13 = arith.constant dense<0.000000e+00> : vector<8x32xf32>
    %20 = tpu.matmul %13, %10, %cst_13 {dimension_numbers = #tpu.dot_dimension_numbers<[1], [0], [0], [1], [0, 0, 1, 1], [], []>} : vector<8x8xf32>, vector<8x32xf32>, vector<8x32xf32> -> vector<8x32xf32>
    %21 = arith.addf %19, %20 : vector<8x32xf32>
    %c0_14 = arith.constant 0 : index
    %c0_15 = arith.constant 0 : index
    %22 = vector.load %arg8[%c0_14, %c0_15] : memref<8x32xf32, #tpu.memory_space<vmem>>, vector<8x32xf32>
    tpu.vector_store %arg8[%c0_14, %c0_15], %21 {strides = array<i32>} : memref<8x32xf32, #tpu.memory_space<vmem>>, vector<8x32xf32>,
    %c0_i32_16 = arith.constant 0 : i32
    %23 = arith.cmpi eq, %arg2, %c0_i32_16 : i32
    %24 = arith.extui %23 : i1 to i32
    %c0_i32_17 = arith.constant 0 : i32
    %25 = arith.cmpi ne, %24, %c0_i32_17 : i32
    scf.if %25 {
      %c0_18 = arith.constant 0 : index
      %c0_19 = arith.constant 0 : index
      %26 = vector.load %arg9[%c0_18, %c0_19] : memref<8x1xf32, #tpu.memory_space<vmem>>, vector<8x1xf32>
      %27 = tpu.reciprocal %26 {approx = true} : vector<8x1xf32> -> vector<8x1xf32>
      %28 = arith.mulf %26, %27 : vector<8x1xf32>
      %cst_20 = arith.constant 2.000000e+00 : f32
      %29 = vector.broadcast %cst_20 : f32 to vector<8x1xf32>
      %30 = arith.subf %29, %28 : vector<8x1xf32>
      %31 = arith.mulf %27, %30 : vector<8x1xf32>
      %c0_21 = arith.constant 0 : index
      %c0_22 = arith.constant 0 : index
      %32 = vector.load %arg8[%c0_21, %c0_22] : memref<8x32xf32, #tpu.memory_space<vmem>>, vector<8x32xf32>
      %33 = vector.broadcast %31 : vector<8x1xf32> to vector<8x32xf32>
      %34 = arith.mulf %32, %33 : vector<8x32xf32>
      %c0_23 = arith.constant 0 : index
      %c0_24 = arith.constant 0 : index
      %c0_25 = arith.constant 0 : index
      %35 = vector.load %arg6[%c0_23, %c0_24, %c0_25] : memref<1x8x32xf32, #tpu.memory_space<vmem>>, vector<1x8x32xf32>
      %36 = vector.shape_cast %35 : vector<1x8x32xf32> to vector<8x32xf32>
      %37 = vector.shape_cast %34 : vector<8x32xf32> to vector<1x8x32xf32>
      tpu.vector_store %arg6[%c0_23, %c0_24, %c0_25], %37 {strides = array<i32>} : memref<1x8x32xf32, #tpu.memory_space<vmem>>, vector<1x8x32xf32>,
    } else {
    }
    return
  }
  func.func @transform_0(%arg0: i32, %arg1: i32, %arg2: i32) -> (i32, i32, i32) {
    %c0_i32 = arith.constant 0 : i32
    %c0_i32_0 = arith.constant 0 : i32
    return %arg0, %arg1, %c0_i32 : i32, i32, i32
  }
  func.func @transform_1(%arg0: i32, %arg1: i32, %arg2: i32) -> (i32, i32, i32) {
    %c0_i32 = arith.constant 0 : i32
    %c0_i32_0 = arith.constant 0 : i32
    %c0_i32_1 = arith.constant 0 : i32
    return %arg0, %c0_i32, %c0_i32_0 : i32, i32, i32
  }
  func.func @transform_2(%arg0: i32, %arg1: i32, %arg2: i32) -> (i32, i32, i32) {
    %c0_i32 = arith.constant 0 : i32
    %c0_i32_0 = arith.constant 0 : i32
    %c0_i32_1 = arith.constant 0 : i32
    return %arg0, %c0_i32, %c0_i32_0 : i32, i32, i32
  }
  func.func @transform_3(%arg0: i32, %arg1: i32, %arg2: i32) -> (i32, i32, i32) {
    %c0_i32 = arith.constant 0 : i32
    %c0_i32_0 = arith.constant 0 : i32
    return %arg0, %arg1, %c0_i32 : i32, i32, i32
  }
}

</mosaic_0001>

<bundles_post_ra>
// kernel: tpu_custom_call.1
= control target key start
LH: loop header
LB: loop body
LE: loop exit
PB: predicated region body
PF: predicated region fallthrough
CT: control target
= control target key end

     0   :  { %s997_s0 = inlined_call_operand.hbm [shape: f32[2,8,32], index: 0, kind: input, shape index: {}]   ;;  %s998_s1 = inlined_call_operand.hbm [shape: f32[2,8,32], index: 1, kind: input, shape index: {}]   ;;  %s999_s2 = inlined_call_operand.hbm [shape: f32[2,8,32], index: 2, kind: input, shape index: {}]   ;;  %s1000_s3 = inlined_call_operand.hbm [shape: f32[2,8,32], index: 3, kind: output, shape index: {}]  }
   0x1   :  { %1003 = sst [smem:[#allocation18_spill]] %s998_s1 }
   0x2   :  { %8 = vsyncpa [#allocation6], 0 }
   0x3   :  { %10 = vsyncpa [#allocation6 + $0x1], 0 }
   0x4   :  { %11 = vsyncpa [#allocation9], 0 }
   0x5   :  { %13 = vsyncpa [#allocation9 + $0x1], 0 }
   0x6   :  { %14 = vsyncpa [#allocation7], 0 }
   0x7   :  { %16 = vsyncpa [#allocation7 + $0x1], 0  ;;  %s831_s12 = smov 0   ;;  %s833_s13 = smov 0  }
   0x8   :  { %s835_s14 = smov 0   ;;  %s837_s15 = smov 0  }
   0x9   :  { %s839_s16 = smov 0   ;;  %s841_s17 = smov 0  }
   0xa LB: > { %1004 = sst [smem:[#allocation15_spill]] %s803_s16  ;;  %s862_s18 = sadd.s32 4294967295, %s807_s17   ;;  %s807_s17 = sphi %s841_s17, %s22_s17   ;;  %s803_s16 = sphi %s839_s16, %s1016_s16   ;;  %s799_s15 = sphi %s837_s15, %s1015_s15   ;;  %s795_s14 = sphi %s835_s14, %s1019_s14   ;;  %s791_s13 = sphi %s833_s13, %s1018_s13   ;;  %s787_s12 = sphi %s831_s12, %s1017_s12  }
   0xb   : > { %s531_s19 = sadd.s32 4294967294, %s807_s17   ;;  %s41_s20 = sadd.s32 1, %s803_s16 }
   0xc   : > { %s50_s21 = sadd.s32 1, %s795_s14  ;;  %p43_p0 = scmp.ge.s32.totalorder %s41_s20, 2 }
   0xd   : > { %p57_p1 = scmp.ne.s32.totalorder %s795_s14, %s791_s13  ;;  %p58_p2 = scmp.eq.s32.totalorder %s807_s17, 0 }
   0xe   : > { %p63_p3 = scmp.ne.s32.totalorder %s791_s13, %s787_s12  ;;  %s1021_s20 = smov (%p43_p0, %s41_s20), 0 }
   0xf   : > { %1005 = sst [smem:[#allocation16_spill]] %s1021_s20  ;;  %p874_p4 = por %p58_p2, %p57_p1 }
  0x10   : > { %p64_p5 = scmp.eq.s32.totalorder %s862_s18, 0  ;;  %s45_s23 = ssub.s32 %s803_s16, %s1021_s20 }
  0x11   : > { %p141_p6 = scmp.eq.s32.totalorder %s862_s18, 1  ;;  %p48_p7 = scmp.eq.s32.totalorder %s45_s23, 0 }
  0x12   : > { %p882_p8 = por %p64_p5, %p63_p3  ;;  %p147_p10 = scmp.eq.s32.totalorder %s531_s19, 1 }
  0x13   : > { %p886_p9 = por %p141_p6, %p57_p1  ;;  %p533_p12 = scmp.ge.s32.totalorder %s807_s17, 2 }
  0x14   : > { %s891_s26 = scalar_select %p48_p7, %s795_s14, %s50_s21  }
  0x15   : > { %p893_p11 = por %p147_p10, %p63_p3  ;;  %p574_p13 = scmp.lt.s32.totalorder %s807_s17, 2 }
  0x16   : > { %1009 = sst [smem:[#allocation17_spill]] %s891_s26  ;;  %s167_s28 = sand.u32 1, %s795_s14  }
  0x17   : > { %s534_s29 = sshll.u32 %s167_s28, 3  ;;  %s535_s30 = sshll.u32 %s803_s16, 3 }
  0x18   : > { %p903_p0 = pnand %p574_p13, %p874_p4  ;;  %s187_s5 = sand.u32 1, %s807_s17  }
  0x19   : > { %s1012_s1 = sld [smem:[#allocation18_spill]]  ;;  %s191_s10 = scalar_lea.vmem [#allocation8], %s534_s29 }
  0x1a   : > { %s199_s11 = sshll.u32 %s191_s10, 4  ;;  %s188_s19 = scalar_lea.sflag [#allocation9], %s187_s5  ;;  %s200_s11 = int_to_ptr.vmem [resolvable:$true] %s199_s11 }
  0x1b   : > { %p540_p1 = scmp.ge.s32.totalorder %s807_s17, 1  ;;  %p223_p2 = scmp.lt.s32.totalorder %s807_s17, 3 }
  0x1c   : > { %s176_s6 = scalar_lea.hbm %s997_s0, %s535_s30  ;;  %s168_s10 = scalar_lea.sflag [#allocation6], %s167_s28 }
  0x1d   : > { %p915_p3 = pnand %p540_p1, %p223_p2  ;;  %s178_s7 = sshll.u32 %s176_s6, 4  ;;  %s179_s7 = int_to_ptr.hbm [resolvable:$true] %s178_s7 }
  0x1e   : > { %s210_s16 = scalar_lea.vmem [#allocation10], %s534_s29  ;;  %s932_s22 = sand.u32 (!%p915_p3), 1, %s791_s13  }
  0x1f   : > { %s195_s8 = scalar_lea.hbm %s1012_s1, %s535_s30  ;;  %s218_s26 = sshll.u32 %s210_s16, 4  ;;  %s219_s26 = int_to_ptr.vmem [resolvable:$true] %s218_s26 }
  0x20   : > { %s197_s9 = sshll.u32 %s195_s8, 4  ;;  %s171_s8 = scalar_lea.vmem [#allocation5], %s534_s29  ;;  %s198_s9 = int_to_ptr.hbm [resolvable:$true] %s197_s9 }
  0x21   : > { %566 = dma.hbm_to_vmem [thread:$0]  (!%p903_p0), %s198_s9, 128, %s200_s11, %s188_s19  }
  0x22   : > { %s180_s1 = sshll.u32 %s171_s8, 4  ;;  %s214_s11 = scalar_lea.hbm %s999_s2, %s535_s30  ;;  %s181_s1 = int_to_ptr.vmem [resolvable:$true] %s180_s1 }
  0x23   : > { %563 = dma.hbm_to_vmem [thread:$0]  (!%p903_p0), %s179_s7, 128, %s181_s1, %s168_s10  }
  0x24   : > { %s216_s20 = sshll.u32 %s214_s11, 4  ;;  %227 = sbr.rel (%p915_p3) target bundleno = 451 (0x1c3), region = 32  ;;  %s217_s20 = int_to_ptr.hbm [resolvable:$true] %s216_s20 }
  0x25   : > { %569 = dma.hbm_to_vmem [thread:$0]  (!%p903_p0), %s217_s20, 128, %s219_s26, %s188_s19  }
  0x26   : > { %s935_s1 = sshll.u32 (!%p915_p3), %s932_s22, 3  ;;  %s230_s28 = scalar_lea.sflag (!%p915_p3), [#allocation6], %s932_s22 }
  0x27   : > { %s233_s30 = scalar_lea.vmem (!%p915_p3), [#allocation5], %s935_s1 }
  0x29   : > { %774 = dma.done.wait (%p882_p8), %s230_s28, 128  }
  0x2a   : > { %776 = vsyncadd (%p882_p8), %s230_s28, 4294967168  ;;  %s239_s16 = sand.u32 1, %s862_s18   ;;  %s243_s26 = scalar_lea.vmem [#allocation8], %s935_s1 }
  0x2b   : > { %s240_s20 = scalar_lea.sflag [#allocation9], %s239_s16 }
  0x2c   : > { %778 = dma.done.wait (%p882_p8), %s240_s20, 256  }
  0x2d   : > { %780 = vsyncadd (%p882_p8), %s240_s20, 4294967040  ;;  %vm291_vm0 = vcmask 261120   ;;  %v295_v0 = vld [vmem:[%s233_s30] sm:$0xff]  ;;  %v300_v1 = vld [vmem:[%s243_s26] sm:$0xff]  ;;  %s253_s18 = scalar_lea.vmem [#allocation10], %s935_s1  ;;  %vm293_vm1 = vcmask 7168  }
  0x2e   : > { %v296_v2 = vmul.f32 0.17677669, %v295_v0  ;;  %545 = vmatpush.xpose.msk.msra.mxu0 %vm291_vm0, %v300_v1  ;;  %v302_v4 = vld [vmem:[%s253_s18] sm:$0xff]  ;;  %v809_v5 = vmov 0.0   ;;  %vm334_vm2 = vcmask 64512   ;;  %v810_v10 = vmov 0  }
  0x2f   : > { %360 = vmatpush.msra.mxu1 %v302_v4  ;;  %294 = vst.msk [vmem:[#allocation4] sm:$0xff] %vm293_vm1, %v809_v5  ;;  %626 = vset.pattern.permute.xlu0 %v810_v10  ;;  %s549_s24 = sshll.u32 %s799_s15, 3  ;;  %s286_s21 = scalar_lea.vmem [#allocation11], %s935_s1 }
  0x30   : > { %297 = vst.msk [vmem:[#allocation2] sm:$0xff] %vm291_vm0, %v296_v2  ;;  %s395_s19 = scalar_lea.hbm %s1000_s3, %s549_s24  ;;  %s397_s23 = sshll.u32 %s286_s21, 4  ;;  %s398_s23 = int_to_ptr.vmem [resolvable:$true] %s397_s23 }
  0x31   : > { %292 = vst.msk [vmem:[#allocation3] sm:$0xff] %vm291_vm0, %v809_v5  ;;  %s399_s6 = sshll.u32 %s395_s19, 4  ;;  %s384_s7 = scalar_lea.sflag [#allocation7], %s932_s22  ;;  %s400_s6 = int_to_ptr.hbm [resolvable:$true] %s399_s6 }
  0x32   : > { %s735_s8 = sshra.s32 %s400_s6, 4  ;;  %s741_s9 = scalar_lea.hbm %s1000_s3, 16  ;;  %s736_s8 = int_to_ptr.hbm [resolvable:$true] %s735_s8 }
  0x33   : > { %s737_s10 = scalar_lea.hbm %s736_s8, 8  ;;  %p742_p7 = scmp.lt.s32.totalorder %s736_s8, %s1000_s3 }
  0x34   : > { %p738_p4 = scmp.ne.s32.totalorder %s736_s8, %s737_s10  ;;  %p743_p8 = scmp.lt.s32.totalorder %s741_s9, %s737_s10 }
  0x36   : > { %v333_v11 = vld [vmem:[#allocation4] sm:$0xff]  ;;  %p739_p5 = pnand %p738_p4, %p886_p9  ;;  %p744_p10 = por %p743_p8, %p742_p7 }
  0x37   : > { %v303_v3 = vld [vmem:[#allocation2] sm:$0xff] }
  0x38   : > { %546 = vmatmul.msk.f32.vlgmr.msra.gmra.mxu0 %vm291_vm0, %v303_v3  ;;  %v341_v14 = vld [vmem:[#allocation3] sm:$0xff]  ;;  %p740_p6 = pneg %p739_p5 }
  0x3a   : > { %p745_p13 = pnand %p744_p10, %p740_p6 }
  0xb5   : > { %v328_v6 = vpop.f32.mrf.mxu0 }
  0xb6   : > { %v331_v7 = vmul.f32 1.442695, %v328_v6 }
  0xb8   : > { %627 = vpow2.f32 %v331_v7 }
  0xbe   : > { %v628_v8 = vpop.eup %627 }
  0xbf   : > { %547 = vmatmul.msk.f32.vlgmr.msra.gmra.mxu1 %vm334_vm2, %v628_v8  ;;  %v335_v9 = vsel %vm334_vm2, %v628_v8, 0.0 }
  0xc0   : > { %336 = vadd.xlane.f32.xlu0 %v335_v9 }
 0x133   : > { %v337_v12 = vpop.xlane.xlu0 %336 }
 0x134   : > { %v338_v13 = vadd.f32 %v337_v12, %v333_v11 }
 0x136   : > { %340 = vst.msk [vmem:[#allocation4] sm:$0xff] %vm293_vm1, %v338_v13 }
 0x13c   : > { %v362_v15 = vpop.f32.mrf.mxu1 }
 0x13d   : > { %v365_v16 = vadd.f32 %v362_v15, %v341_v14  ;;  %v370_v17 = vld [vmem:[#allocation4] sm:$0xff] }
 0x13e   : > { %629 = vrcp.f32 %v370_v17 }
 0x13f   : > { %366 = vst.msk [vmem:[#allocation3] sm:$0xff] %vm291_vm0, %v365_v16 }
 0x144   : > { %v630_v18 = vpop.eup %629 }
 0x145   : > { %v372_v19 = vmul.f32 %v630_v18, %v370_v17 }
 0x146   : > { %v375_v23 = vld [vmem:[#allocation3] sm:$0xff] }
 0x147   : > { %v373_v20 = vsub.f32 2.0, %v372_v19 }
 0x149   : > { %v374_v21 = vmul.f32 %v630_v18, %v373_v20 }
 0x14b   : > { %378 = vperm.xlu0 %626, %v374_v21  }
 0x1bd   : > { %v379_v22 = vpop.permute.xlu0 %378 }
 0x1be   : > { %v381_v24 = vmul.f32 %v379_v22, %v375_v23 }
 0x1c0   : > { %382 = vst.msk [vmem:[%s286_s21] sm:$0xff] %vm291_vm0, %v381_v24 }
 0x1c1   : > { %748 = shalt.err (!%p745_p13)
}
 0x1c2   : > { %558 = dma.vmem_to_hbm [thread:$0]  (%p886_p9), %s398_s23, 128, %s400_s6, %s384_s7  }
 0x1c3 PF: > { %s411_s22 = sand.u32 1, %s787_s12   ;;  %p571_p0 = pnand %p533_p12, %p893_p11 }
 0x1c4   : > { %s412_s28 = scalar_lea.sflag [#allocation7], %s411_s22 }
 0x1c5   : > { %p572_p1 = pneg %p571_p0 }
 0x1c7   : > { %782 = dma.done.wait (%p572_p1), %s412_s28, 128  }
 0x1c8   : > { %784 = vsyncadd (%p572_p1), %s412_s28, 4294967168  ;;  %s22_s17 = sadd.s32 1, %s807_s17   ;;  %s1014_s30 = sld [smem:[#allocation17_spill]] }
 0x1c9   : > { %p19_p2 = scmp.ge.s32.totalorder %s22_s17, 4   ;;  %s1015_s15 = sld [smem:[#allocation15_spill]] }
 0x1ca   : > { %s1016_s16 = sld [smem:[#allocation16_spill]]  ;;  %s1017_s12 = smov %s791_s13 }
 0x1cb   : > { %s1018_s13 = smov %s795_s14  ;;  %21 = sbr.rel (!%p19_p2) target bundleno = 10 (0xa), region = 111 }
 0x1ce   : > { %s1019_s14 = smov %s1014_s30 }
 0x1d0   :  { %418 = vsyncpa [#allocation6], 1 }
 0x1d1   :  { %420 = vsyncpa [#allocation6 + $0x1], 1 }
 0x1d2   :  { %421 = vsyncpa [#allocation9], 1 }
 0x1d3   :  { %423 = vsyncpa [#allocation9 + $0x1], 1 }
 0x1d4   :  { %424 = vsyncpa [#allocation7], 1 }
 0x1d5   :  { %426 = vsyncpa [#allocation7 + $0x1], 1 }

</bundles_post_ra>
